<compile_context>
chip_gen: v6e
topology: v6e:2x2x1
jax: 0.10.0
libtpu: 0.0.40
codegen_flags: <defaults>
</compile_context>

<pallas_src>
import functools

import jax
import jax.numpy as jnp
from jax.experimental import pallas as pl
from jax.experimental.pallas import tpu as pltpu

HIDDEN = 40


def _round_up(x, m):
    return (x + m - 1) // m * m


def _mlp_kernel(x_ref, w1_ref, b1_ref, w2_ref, b2_ref, w3_ref, b3_ref, o_ref):
    # x_ref:  (1, TB)   batch tile on lanes
    # w1_ref: (40, 1)   b1_ref: (40, 1)
    # w2_ref: (40, 40)  b2_ref: (40, 1)
    # w3_ref: (40, 1)   b3_ref: (1,) in SMEM
    # o_ref:  (1, TB)
    x = x_ref[...]                                               # (1, TB)

    # Layer 1: in_features == 1 -> rank-1 outer product; pure VPU broadcast.
    h1 = jnp.maximum(w1_ref[...] * x + b1_ref[...], 0.0)         # (40, TB)

    # Layer 2: the only genuine matmul; MXU with explicit f32 accumulation.
    h2 = jnp.dot(w2_ref[...], h1, preferred_element_type=jnp.float32) + b2_ref[...]
    h2 = jnp.maximum(h2, 0.0)                                    # (40, TB)

    # Layer 3: out_features == 1 -> VPU multiply + cross-sublane reduce (XLU),
    # plus a scalar bias read from SMEM.
    y = jnp.sum(w3_ref[...] * h2, axis=0, keepdims=True) + b3_ref[0]
    o_ref[...] = y.astype(o_ref.dtype)                           # (1, TB)


@functools.partial(jax.jit, static_argnames=("block_n",))
def based_regressor_forward(x, params, block_n=1024):
    """x: (N, 1) f32. params: dict of fc{1,2,3}.{weight,bias} in torch layout
    (weight: (out, in), bias: (out,)). Returns (N, 1) f32.

    block_n is the per-step batch tile (rounded to a multiple of 128). Each step
    keeps two (40, block_n) f32 intermediates live (~320 B/row), so even
    block_n=32768 stays well under v7x's 64 MiB VMEM / 32 MiB scoped default.
    """
    n = x.shape[0]

    # Batch tile on lanes: multiple of 128, capped by the padded batch.
    block = min(_round_up(block_n, 128), _round_up(n, 128))
    n_pad = _round_up(n, block)

    # Lane-dense input slab (1, n_pad); zero padding is sliced off afterwards.
    x_row = jnp.pad(x.reshape(1, n), ((0, 0), (0, n_pad - n)))

    # Parameter re-layout: only cheap vector reshapes — torch's (out, in)
    # fc2.weight is already in the W @ h orientation this layout wants.
    w1 = params["fc1.weight"].reshape(HIDDEN, 1)   # (40, 1)
    b1 = params["fc1.bias"].reshape(HIDDEN, 1)     # (40, 1)
    w2 = params["fc2.weight"]                      # (40, 40), used as-is
    b2 = params["fc2.bias"].reshape(HIDDEN, 1)     # (40, 1)
    w3 = params["fc3.weight"].reshape(HIDDEN, 1)   # (40, 1)
    b3 = params["fc3.bias"].reshape(1)             # (1,) scalar -> SMEM

    grid = (n_pad // block,)
    resident = lambda i: (0, 0)  # weights/biases resident across all batch tiles

    out = pl.pallas_call(
        _mlp_kernel,
        out_shape=jax.ShapeDtypeStruct((1, n_pad), jnp.float32),
        grid_spec=pltpu.PrefetchScalarGridSpec(
            num_scalar_prefetch=0,
            grid=grid,
            in_specs=[
                pl.BlockSpec((1, block), lambda i: (0, i)),          # x (lane-dense)
                pl.BlockSpec((HIDDEN, 1), resident),                 # w1 column
                pl.BlockSpec((HIDDEN, 1), resident),                 # b1 column
                pl.BlockSpec((HIDDEN, HIDDEN), resident),            # w2
                pl.BlockSpec((HIDDEN, 1), resident),                 # b2 column
                pl.BlockSpec((HIDDEN, 1), resident),                 # w3 column
                pl.BlockSpec(memory_space=pltpu.MemorySpace.SMEM),   # b3 scalar
            ],
            out_specs=pl.BlockSpec((1, block), lambda i: (0, i)),    # lane-dense out
        ),
        compiler_params=pltpu.CompilerParams(
            # Parallel batch axis: megacore sharding / both TCs on v7x when the
            # grid has >= 2 steps.
            dimension_semantics=("parallel",)),
    )(x_row, w1, b1, w2, b2, w3, b3)

    return out[0, :n].reshape(n, 1)


def init_params(key):
    """Deterministic init mimicking torch.nn.Linear default (U[-1/sqrt(fan_in), 1/sqrt(fan_in)])."""
    def linear(k, out_f, in_f):
        kw, kb = jax.random.split(k)
        bound = 1.0 / jnp.sqrt(jnp.float32(in_f))
        w = jax.random.uniform(kw, (out_f, in_f), jnp.float32, -bound, bound)
        b = jax.random.uniform(kb, (out_f,), jnp.float32, -bound, bound)
        return w, b

    k1, k2, k3 = jax.random.split(key, 3)
    w1, b1 = linear(k1, HIDDEN, 1)
    w2, b2 = linear(k2, HIDDEN, HIDDEN)
    w3, b3 = linear(k3, 1, HIDDEN)
    return {
        "fc1.weight": w1, "fc1.bias": b1,
        "fc2.weight": w2, "fc2.bias": b2,
        "fc3.weight": w3, "fc3.bias": b3,
    }


def _reference(x, p):
    h = jnp.maximum(x @ p["fc1.weight"].T + p["fc1.bias"], 0.0)
    h = jnp.maximum(h @ p["fc2.weight"].T + p["fc2.bias"], 0.0)
    return h @ p["fc3.weight"].T + p["fc3.bias"]


if __name__ == "__main__":
    key = jax.random.PRNGKey(0)
    kx, kp = jax.random.split(key)

    # Small demo batch; deliberately NOT a multiple of the tile to exercise the
    # padding path, with block_n=128 so the grid has multiple parallel steps.
    N = 300
    x = jax.random.normal(kx, (N, 1), jnp.float32)
    params = init_params(kp)

    y = based_regressor_forward(x, params, block_n=128)
    jax.block_until_ready(y)

    y_ref = _reference(x, params)
    assert y.shape == (N, 1)
    assert jnp.allclose(y, y_ref, atol=1e-4, rtol=1e-4), float(jnp.max(jnp.abs(y - y_ref)))
    print("KERNEL_OK")
</pallas_src>

<mosaic_0001>
module attributes {stable_mosaic.version = 11 : i64} {
  func.func @_mlp_kernel(%arg0: i32, %arg1: memref<1x128xf32, #tpu.memory_space<vmem>>, %arg2: memref<40x1xf32, #tpu.memory_space<vmem>>, %arg3: memref<40x1xf32, #tpu.memory_space<vmem>>, %arg4: memref<40x40xf32, #tpu.memory_space<vmem>>, %arg5: memref<40x1xf32, #tpu.memory_space<vmem>>, %arg6: memref<40x1xf32, #tpu.memory_space<vmem>>, %arg7: memref<1xf32, #tpu.memory_space<smem>>, %arg8: memref<1x128xf32, #tpu.memory_space<vmem>>) attributes {dimension_semantics = [#tpu.dimension_semantics<parallel>], iteration_bounds = array<i64: 3>, scalar_prefetch = 0 : i64, scratch_operands = 0 : i64, tpu.core_type = #tpu.core_type<tc>, window_params = [{transform_indices = @transform_0, window_bounds = array<i64: 1, 128>}, {pipeline_mode = #tpu.pipeline_mode<synchronous>, transform_indices = @transform_1, window_bounds = array<i64: 40, 1>}, {pipeline_mode = #tpu.pipeline_mode<synchronous>, transform_indices = @transform_2, window_bounds = array<i64: 40, 1>}, {pipeline_mode = #tpu.pipeline_mode<synchronous>, transform_indices = @transform_3, window_bounds = array<i64: 40, 40>}, {pipeline_mode = #tpu.pipeline_mode<synchronous>, transform_indices = @transform_4, window_bounds = array<i64: 40, 1>}, {pipeline_mode = #tpu.pipeline_mode<synchronous>, transform_indices = @transform_5, window_bounds = array<i64: 40, 1>}, {transform_indices = @transform_6, window_bounds = array<i64: 1>}, {transform_indices = @transform_7, window_bounds = array<i64: 1, 128>}]} {
    %c0 = arith.constant 0 : index
    %c0_0 = arith.constant 0 : index
    %0 = vector.load %arg1[%c0, %c0_0] : memref<1x128xf32, #tpu.memory_space<vmem>>, vector<1x128xf32>
    %c0_1 = arith.constant 0 : index
    %c0_2 = arith.constant 0 : index
    %1 = vector.load %arg2[%c0_1, %c0_2] : memref<40x1xf32, #tpu.memory_space<vmem>>, vector<40x1xf32>
    %2 = vector.broadcast %1 : vector<40x1xf32> to vector<40x128xf32>
    %3 = vector.broadcast %0 : vector<1x128xf32> to vector<40x128xf32>
    %4 = arith.mulf %2, %3 : vector<40x128xf32>
    %c0_3 = arith.constant 0 : index
    %c0_4 = arith.constant 0 : index
    %5 = vector.load %arg3[%c0_3, %c0_4] : memref<40x1xf32, #tpu.memory_space<vmem>>, vector<40x1xf32>
    %6 = vector.broadcast %5 : vector<40x1xf32> to vector<40x128xf32>
    %7 = arith.addf %4, %6 : vector<40x128xf32>
    %cst = arith.constant 0.000000e+00 : f32
    %8 = vector.broadcast %cst : f32 to vector<40x128xf32>
    %9 = arith.maximumf %7, %8 : vector<40x128xf32>
    %c0_5 = arith.constant 0 : index
    %c0_6 = arith.constant 0 : index
    %10 = vector.load %arg4[%c0_5, %c0_6] : memref<40x40xf32, #tpu.memory_space<vmem>>, vector<40x40xf32>
    %cst_7 = arith.constant dense<0.000000e+00> : vector<40x128xf32>
    %11 = tpu.matmul %10, %9, %cst_7 {dimension_numbers = #tpu.dot_dimension_numbers<[1], [0], [0], [1], [0, 0, 1, 1], [], []>} : vector<40x40xf32>, vector<40x128xf32>, vector<40x128xf32> -> vector<40x128xf32>
    %c0_8 = arith.constant 0 : index
    %c0_9 = arith.constant 0 : index
    %12 = vector.load %arg5[%c0_8, %c0_9] : memref<40x1xf32, #tpu.memory_space<vmem>>, vector<40x1xf32>
    %13 = vector.broadcast %12 : vector<40x1xf32> to vector<40x128xf32>
    %14 = arith.addf %11, %13 : vector<40x128xf32>
    %cst_10 = arith.constant 0.000000e+00 : f32
    %15 = vector.broadcast %cst_10 : f32 to vector<40x128xf32>
    %16 = arith.maximumf %14, %15 : vector<40x128xf32>
    %c0_11 = arith.constant 0 : index
    %c0_12 = arith.constant 0 : index
    %17 = vector.load %arg6[%c0_11, %c0_12] : memref<40x1xf32, #tpu.memory_space<vmem>>, vector<40x1xf32>
    %18 = vector.broadcast %17 : vector<40x1xf32> to vector<40x128xf32>
    %19 = arith.mulf %18, %16 : vector<40x128xf32>
    %cst_13 = arith.constant dense<0.000000e+00> : vector<128xf32>
    %20 = vector.multi_reduction <add>, %19, %cst_13 [0] : vector<40x128xf32> to vector<128xf32>
    %21 = vector.shape_cast %20 : vector<128xf32> to vector<1x128xf32>
    %c0_14 = arith.constant 0 : index
    %22 = memref.load %arg7[%c0_14] : memref<1xf32, #tpu.memory_space<smem>>
    %23 = vector.broadcast %22 : f32 to vector<1x128xf32>
    %24 = arith.addf %21, %23 : vector<1x128xf32>
    %c0_15 = arith.constant 0 : index
    %c0_16 = arith.constant 0 : index
    %25 = vector.load %arg8[%c0_15, %c0_16] : memref<1x128xf32, #tpu.memory_space<vmem>>, vector<1x128xf32>
    tpu.vector_store %arg8[%c0_15, %c0_16], %24 {strides = array<i32>} : memref<1x128xf32, #tpu.memory_space<vmem>>, vector<1x128xf32>,
    return
  }
  func.func @transform_0(%arg0: i32) -> (i32, i32) {
    %c0_i32 = arith.constant 0 : i32
    %c0_i32_0 = arith.constant 0 : i32
    return %c0_i32, %arg0 : i32, i32
  }
  func.func @transform_1(%arg0: i32) -> (i32, i32) {
    %c0_i32 = arith.constant 0 : i32
    %c0_i32_0 = arith.constant 0 : i32
    %c0_i32_1 = arith.constant 0 : i32
    return %c0_i32, %c0_i32_0 : i32, i32
  }
  func.func @transform_2(%arg0: i32) -> (i32, i32) {
    %c0_i32 = arith.constant 0 : i32
    %c0_i32_0 = arith.constant 0 : i32
    %c0_i32_1 = arith.constant 0 : i32
    return %c0_i32, %c0_i32_0 : i32, i32
  }
  func.func @transform_3(%arg0: i32) -> (i32, i32) {
    %c0_i32 = arith.constant 0 : i32
    %c0_i32_0 = arith.constant 0 : i32
    %c0_i32_1 = arith.constant 0 : i32
    return %c0_i32, %c0_i32_0 : i32, i32
  }
  func.func @transform_4(%arg0: i32) -> (i32, i32) {
    %c0_i32 = arith.constant 0 : i32
    %c0_i32_0 = arith.constant 0 : i32
    %c0_i32_1 = arith.constant 0 : i32
    return %c0_i32, %c0_i32_0 : i32, i32
  }
  func.func @transform_5(%arg0: i32) -> (i32, i32) {
    %c0_i32 = arith.constant 0 : i32
    %c0_i32_0 = arith.constant 0 : i32
    %c0_i32_1 = arith.constant 0 : i32
    return %c0_i32, %c0_i32_0 : i32, i32
  }
  func.func @transform_6(%arg0: i32) -> i32 {
    %c0_i32 = arith.constant 0 : i32
    %c0_i32_0 = arith.constant 0 : i32
    return %c0_i32 : i32
  }
  func.func @transform_7(%arg0: i32) -> (i32, i32) {
    %c0_i32 = arith.constant 0 : i32
    %c0_i32_0 = arith.constant 0 : i32
    return %c0_i32, %arg0 : i32, i32
  }
}

</mosaic_0001>

<bundles_post_ra>
// kernel: based_regressor_forward.1
= control target key start
LH: loop header
LB: loop body
LE: loop exit
PB: predicated region body
PF: predicated region fallthrough
CT: control target
= control target key end

     0   :  { %s716_s26 = smov 0   ;;  %s841_s0 = inlined_call_operand.vmem [shape: f32[1,384], index: 0, kind: input, shape index: {}]   ;;  %s842_s1 = inlined_call_operand.vmem [shape: f32[40,1], index: 1, kind: input, shape index: {}]   ;;  %s843_s2 = inlined_call_operand.vmem [shape: f32[40,1], index: 2, kind: input, shape index: {}]   ;;  %s844_s3 = inlined_call_operand.vmem [shape: f32[40,40], index: 3, kind: input, shape index: {}]   ;;  %s845_s4 = inlined_call_operand.vmem [shape: f32[40,1], index: 4, kind: input, shape index: {}]   ;;  %s846_s5 = inlined_call_operand.vmem [shape: f32[40,1], index: 5, kind: input, shape index: {}]   ;;  %s847_s6 = inlined_call_operand.<no memory space> [shape: f32[1], index: 6, kind: input, shape index: {}]   ;;  %s848_s7 = inlined_call_operand.vmem [shape: f32[1,384], index: 7, kind: output, shape index: {}]  }
   0x1   :  { %12 = sst [smem:[#allocation2]] %s847_s6 }
   0x2 LB: > { %s591_s27 = sadd.s32 4294967295, %s668_s26   ;;  %p595_p0 = scmp.ge.s32.totalorder %s668_s26, 1  ;;  %s668_s26 = sphi %s716_s26, %s18_s26  }
   0x3   : > { %p236_p1 = scmp.lt.s32.totalorder %s668_s26, 4 }
   0x5   : > { %p237_p2 = pnand %p595_p0, %p236_p1 }
   0x6   : > { %p264_p3 = scmp.lt.s32.totalorder (!%p237_p2), %s591_s27, 2  ;;  %s543_s13 = sld [smem:[#allocation2]] (!%p237_p2) }
   0x7   : > { %240 = sbr.rel (%p237_p2) target bundleno = 389 (0x185), region = 48 }
   0xc   : > { %v316_v0 = vld [vmem:[%s843_s2 + $0x20] sm:$0xff]  ;;  %v670_v2 = vmov 0   ;;  %v274_v3 = vld [vmem:[%s842_s1 + $0x18] sm:$0xff]  ;;  %v273_v4 = vld [vmem:[%s842_s1 + $0x10] sm:$0xff]  ;;  %v671_v5 = vmov 0.0   ;;  %vm672_vm0 = vmmov 0  }
   0xd   : > { %v275_v1 = vld [vmem:[%s842_s1 + $0x20] sm:$0xff]  ;;  %661 = vset.pattern.permute.xlu1 %v670_v2  ;;  %660 = vset.pattern.permute.xlu0 %v670_v2  ;;  %v315_v6 = vld [vmem:[%s843_s2 + $0x18] sm:$0xff]  ;;  %v272_v7 = vld [vmem:[%s842_s1 + $0x8] sm:$0xff]  ;;  %s850_s27 = smov (!%p264_p3, %s591_s27), 2  ;;  %vm387_vm1 = vcmask 326656  }
   0xe   : > { %339 = vperm.xlu1 %661, %v316_v0   ;;  %298 = vperm.xlu0 %660, %v275_v1   ;;  %v314_v8 = vld [vmem:[%s843_s2 + $0x10] sm:$0xff]  ;;  %v271_v9 = vld [vmem:[%s842_s1] sm:$0xff]  ;;  %v313_v10 = vld [vmem:[%s843_s2 + $0x8] sm:$0xff]  ;;  %s266_s24 = scalar_lea.vmem %s841_s0, %s850_s27  ;;  %s269_s16 = scalar_lea.vmem %s848_s7, %s850_s27 }
   0xf   : > { %614 = vmatprep.subr.mxu0 %v671_v5  ;;  %639 = vmatprep.subr.mxu1 %v671_v5  ;;  %v312_v11 = vld [vmem:[%s843_s2] sm:$0xff]  ;;  %v358_v13 = vld [vmem:[%s845_s4 + $0x8] sm:$0xff]  ;;  %v359_v14 = vld [vmem:[%s845_s4 + $0x10] sm:$0xff] }
  0x10   : > { %v357_v12 = vld [vmem:[%s845_s4] sm:$0xff]  ;;  %624 = vmatprep.mubr.msk.f32.mxu0 %vm672_vm0, %v671_v5  ;;  %633 = vmatprep.mubr.msk.f32.mxu1 %vm672_vm0, %v671_v5  ;;  %v360_v15 = vld [vmem:[%s845_s4 + $0x18] sm:$0xff]  ;;  %v499_v17 = vld [vmem:[%s846_s5 + $0x8] sm:$0xff] }
  0x11   : > { %v498_v16 = vld [vmem:[%s846_s5] sm:$0xff]  ;;  %v500_v19 = vld [vmem:[%s846_s5 + $0x10] sm:$0xff]  ;;  %v501_v20 = vld [vmem:[%s846_s5 + $0x18] sm:$0xff] }
  0x12   : > { %293 = vperm.xlu0 %660, %v274_v3   ;;  %288 = vperm.xlu1 %661, %v273_v4   ;;  %v361_v18 = vld [vmem:[%s845_s4 + $0x20] sm:$0xff]  ;;  %v355_v49 = vld [vmem:[%s844_s3 + $0x18] sm:$0xff]  ;;  %v353_v50 = vld [vmem:[%s844_s3 + $0x8] sm:$0xff] }
  0x13   : > { %v502_v21 = vld [vmem:[%s846_s5 + $0x20] sm:$0xff]  ;;  %v354_v52 = vld [vmem:[%s844_s3 + $0x10] sm:$0xff] }
  0x14   : > { %v596_v22 = vld [vmem:[%s266_s24] ss:$0 sm:$0xff] }
  0x15   : > { %v352_v48 = vld [vmem:[%s844_s3] sm:$0xff] }
  0x16   : > { %334 = vperm.xlu0 %660, %v315_v6   ;;  %283 = vperm.xlu1 %661, %v272_v7   ;;  %v356_v51 = vld [vmem:[%s844_s3 + $0x20] sm:$0xff] }
  0x1a   : > { %329 = vperm.xlu0 %660, %v314_v8   ;;  %278 = vperm.xlu1 %661, %v271_v9  }
  0x1e   : > { %324 = vperm.xlu0 %660, %v313_v10   ;;  %319 = vperm.xlu1 %661, %v312_v11  }
  0x22   : > { %364 = vperm.xlu0 %660, %v357_v12   ;;  %369 = vperm.xlu1 %661, %v358_v13  }
  0x26   : > { %374 = vperm.xlu0 %660, %v359_v14   ;;  %379 = vperm.xlu1 %661, %v360_v15  }
  0x2a   : > { %505 = vperm.xlu0 %660, %v498_v16   ;;  %510 = vperm.xlu1 %661, %v499_v17  }
  0x2e   : > { %384 = vperm.xlu0 %660, %v361_v18   ;;  %515 = vperm.xlu1 %661, %v500_v19  }
  0x32   : > { %520 = vperm.xlu0 %660, %v501_v20   ;;  %525 = vperm.xlu1 %661, %v502_v21  }
  0x89   : > { %v340_v23 = vpop.permute.xlu1 %339  ;;  %v299_v24 = vpop.permute.xlu0 %298 }
  0x8a   : > { %v311_v25 = vmul.f32 %v596_v22, %v299_v24 }
  0x8c   : > { %v346_v26 = vadd.f32 %v340_v23, %v311_v25 }
  0x8d   : > { %v294_v27 = vpop.permute.xlu0 %293  ;;  %v289_v28 = vpop.permute.xlu1 %288 }
  0x8e   : > { %v351_v29 = vmax.f32 %v346_v26, 0.0  ;;  %v310_v30 = vmul.f32 %v596_v22, %v294_v27  ;;  %v309_v34 = vmul.f32 %v596_v22, %v289_v28 }
  0x90   : > { %615 = vmatpush3.msra.mxu0 %v351_v29  ;;  %644 = vmatpush3.msra.mxu1 %v351_v29 }
  0x91   : > { %v335_v31 = vpop.permute.xlu0 %334  ;;  %v284_v32 = vpop.permute.xlu1 %283  ;;  %616 = vmatprep.subr.mxu0 %v671_v5  ;;  %640 = vmatprep.subr.mxu1 %v671_v5 }
  0x92   : > { %v345_v33 = vadd.f32 %v335_v31, %v310_v30  ;;  %v308_v39 = vmul.f32 %v596_v22, %v284_v32 }
  0x94   : > { %v350_v35 = vmax.f32 %v345_v33, 0.0  ;;  %v544_v33 = vstv %s543_s13 }
  0x95   : > { %v330_v36 = vpop.permute.xlu0 %329  ;;  %v279_v37 = vpop.permute.xlu1 %278 }
  0x96   : > { %v344_v38 = vadd.f32 %v330_v36, %v309_v34  ;;  %617 = vmatpush3.msra.mxu0 %v350_v35  ;;  %645 = vmatpush3.msra.mxu1 %v350_v35  ;;  %v307_v41 = vmul.f32 %v596_v22, %v279_v37 }
  0x97   : > { %618 = vmatprep.subr.mxu0 %v671_v5  ;;  %641 = vmatprep.subr.mxu1 %v671_v5 }
  0x98   : > { %v349_v40 = vmax.f32 %v344_v38, 0.0 }
  0x99   : > { %v325_v42 = vpop.permute.xlu0 %324  ;;  %v320_v43 = vpop.permute.xlu1 %319 }
  0x9a   : > { %v343_v44 = vadd.f32 %v325_v42, %v308_v39  ;;  %v342_v45 = vadd.f32 %v320_v43, %v307_v41  ;;  %619 = vmatpush3.msra.mxu0 %v349_v40  ;;  %646 = vmatpush3.msra.mxu1 %v349_v40 }
  0x9b   : > { %620 = vmatprep.subr.mxu0 %v671_v5  ;;  %642 = vmatprep.subr.mxu1 %v671_v5 }
  0x9c   : > { %v348_v46 = vmax.f32 %v343_v44, 0.0  ;;  %v347_v47 = vmax.f32 %v342_v45, 0.0 }
  0x9d   : > { %v365_v53 = vpop.permute.xlu0 %364  ;;  %v370_v54 = vpop.permute.xlu1 %369 }
  0x9e   : > { %621 = vmatpush3.msra.mxu0 %v348_v46  ;;  %647 = vmatpush3.msra.mxu1 %v348_v46 }
  0x9f   : > { %622 = vmatprep.subr.mxu0 %v671_v5  ;;  %643 = vmatprep.subr.mxu1 %v671_v5 }
  0xa0   : > { %623 = vmatpush3.msra.mxu0 %v347_v47  ;;  %648 = vmatpush3.msra.mxu1 %v347_v47 }
  0xa1   : > { %625 = vmatmul.mubr.msk.f32.vlgmr.msra.gmra.mxu0 %vm387_vm1, %v352_v48  ;;  %634 = vmatmul.mubr.msk.f32.vlgmr.msra.gmra.mxu1 %vm387_vm1, %v355_v49  ;;  %v375_v55 = vpop.permute.xlu0 %374  ;;  %v380_v56 = vpop.permute.xlu1 %379 }
  0xa2   : > { %627 = vmatprep.mubr.msk.f32.mxu0 %vm672_vm0, %v671_v5  ;;  %636 = vmatprep.mubr.msk.f32.mxu1 %vm672_vm0, %v671_v5 }
  0xa5   : > { %628 = vmatmul.mubr.msk.f32.gmra.mxu0 %vm387_vm1, %v353_v50  ;;  %637 = vmatmul.mubr.msk.f32.gmra.mxu1 %vm387_vm1, %v356_v51  ;;  %v506_v59 = vpop.permute.xlu0 %505  ;;  %v511_v62 = vpop.permute.xlu1 %510 }
  0xa6   : > { %630 = vmatprep.mubr.msk.f32.mxu0 %vm672_vm0, %v671_v5 }
  0xa9   : > { %631 = vmatmul.mubr.msk.f32.gmra.mxu0 %vm387_vm1, %v354_v52  ;;  %v385_v8 = vpop.permute.xlu0 %384  ;;  %v516_v13 = vpop.permute.xlu1 %515 }
  0xad   : > { %v521_v21 = vpop.permute.xlu0 %520  ;;  %v526_v24 = vpop.permute.xlu1 %525 }
 0x161   : > { %v469_v57 = vpop.f32.mrf.mxu0  ;;  %v484_v58 = vpop.f32.mrf.mxu1 }
 0x162   : > { %v470_v63 = vadd.f32 %v469_v57, %v365_v53  ;;  %v485_v6 = vadd.f32 %v484_v58, %v380_v56 }
 0x163   : > { %v626_v60 = vpop.f32.mrf.mxu0  ;;  %v635_v61 = vpop.f32.mrf.mxu1 }
 0x164   : > { %v493_v5 = vmax.f32 %v470_v63, 0.0  ;;  %v496_v16 = vmax.f32 %v485_v6, 0.0 }
 0x165   : > { %v474_v0 = vpop.f32.mrf.mxu0  ;;  %v489_v1 = vpop.f32.mrf.mxu1 }
 0x166   : > { %v475_v2 = vadd.f32 %v474_v0, %v370_v54  ;;  %v490_v11 = vadd.f32 %v489_v1, %v385_v8  ;;  %v528_v15 = vmul.f32 %v506_v59, %v493_v5  ;;  %v531_v22 = vmul.f32 %v521_v21, %v496_v16 }
 0x167   : > { %v629_v3 = vpop.f32.mrf.mxu0  ;;  %v638_v4 = vpop.f32.mrf.mxu1 }
 0x168   : > { %v494_v7 = vmax.f32 %v475_v2, 0.0  ;;  %v497_v19 = vmax.f32 %v490_v11, 0.0 }
 0x169   : > { %v479_v9 = vpop.f32.mrf.mxu0 }
 0x16a   : > { %v529_v10 = vmul.f32 %v511_v62, %v494_v7  ;;  %v480_v12 = vadd.f32 %v479_v9, %v375_v55  ;;  %v532_v25 = vmul.f32 %v526_v24, %v497_v19 }
 0x16b   : > { %v632_v14 = vpop.f32.mrf.mxu0 }
 0x16c   : > { %v495_v17 = vmax.f32 %v480_v12, 0.0  ;;  %v533_v18 = vadd.f32 %v529_v10, %v528_v15 }
 0x16e   : > { %v530_v20 = vmul.f32 %v516_v13, %v495_v17 }
 0x170   : > { %v534_v23 = vadd.f32 %v533_v18, %v530_v20 }
 0x172   : > { %v535_v26 = vadd.f32 %v534_v23, %v531_v22 }
 0x174   : > { %v536_v27 = vadd.f32 %v535_v26, %v532_v25 }
 0x176   : > { %v537_v28 = vrot.slane %v536_v27, 4 }
 0x178   : > { %v538_v29 = vadd.f32 %v537_v28, %v536_v27 }
 0x17a   : > { %v539_v30 = vrot.slane %v538_v29, 2 }
 0x17c   : > { %v540_v31 = vadd.f32 %v539_v30, %v538_v29 }
 0x17e   : > { %v541_v32 = vrot.slane %v540_v31, 1 }
 0x180   : > { %v542_v34 = vadd.f32 %v541_v32, %v540_v31 }
 0x182   : > { %v545_v35 = vadd.f32 %v544_v33, %v542_v34 }
 0x184   : > { %546 = vst [vmem:[%s269_s16] sm:$0x1] %v545_v35 }
 0x185 PF: > { %s18_s26 = sadd.s32 1, %s668_s26  }
 0x186   : > { %p15_p4 = scmp.ge.s32.totalorder %s18_s26, 5  }
 0x188   :  { %17 = sbr.rel (!%p15_p4) target bundleno = 2 (0x2), region = 78 }

</bundles_post_ra>
